<compile_context>
chip_gen: v5e
topology: v5e:2x2
jax: 0.10.0
libtpu: 0.0.40
codegen_flags: <defaults>
</compile_context>

<pallas_src>
import functools
import math

import jax
import jax.numpy as jnp
from jax.experimental import pallas as pl
from jax.experimental.pallas import tpu as pltpu

EPS = 1e-4


def _cdiv(a, b):
    return -(-a // b)


def _fast_fusion_kernel(w_ref, *refs):
    """Weighted sum of `num` feature tiles with pre-normalized weights.

    w_ref     : SMEM (num,) f32  -- relu(w_i) / (sum_j relu(w_j) + eps)
    refs[:-1] : VMEM (TM, TN)    -- one tile per feature map
    refs[-1]  : VMEM (TM, TN)    -- fused output tile
    """
    o_ref = refs[-1]
    x_refs = refs[:-1]
    # Keep accumulation in f32 even for bf16 inputs: required on v5e (no bf16
    # VALU) and free elsewhere (HBM-bound kernel).
    acc = w_ref[0] * x_refs[0][...].astype(jnp.float32)
    for i in range(1, len(x_refs)):          # small static `num` -> unrolled FMAs
        acc = acc + w_ref[i] * x_refs[i][...].astype(jnp.float32)
    o_ref[...] = acc.astype(o_ref.dtype)


def _vmem_budgets():
    """Generation-aware (block budget, vmem_limit_bytes)."""
    vmem_cap = 64 << 20
    try:
        info = pltpu.get_tpu_info()
        vmem_cap = getattr(info, "vmem_capacity_bytes", vmem_cap) or vmem_cap
    except Exception:
        pass
    if vmem_cap >= (96 << 20):        # v5e / v6e: 128 MiB physical VMEM
        return 28 << 20, 44 << 20
    else:                             # v7x: 64 MiB physical VMEM
        return 22 << 20, 32 << 20


def _choose_tiling(total, num, dtype, block_budget_bytes):
    """Pick a lane-dense (TN) layout and a sublane-aligned row tile TM.

    Returns (tn, tm, rows_padded). The flattened feature is (zero-)padded to
    rows_padded * tn elements so blocks tile it exactly.
    """
    itemsize = jnp.dtype(dtype).itemsize
    sub = max(8, 32 // itemsize)          # f32: 8, bf16: 16, int8/fp8: 32

    # Lane width: largest multiple of 128 that divides `total` while keeping
    # enough rows for a multi-step grid; otherwise fall back to 128 + padding.
    candidates = [c for c in (1024, 512, 384, 256, 128) if total % c == 0]
    good = [c for c in candidates if total // c >= 8 * sub]
    ok = [c for c in candidates if total // c >= sub]
    tn = (good or ok or candidates or [128])[0]

    rows = _cdiv(total, tn)

    # Row tile: VMEM budget for (2*num + 2) double-buffered blocks, capped so
    # the grid has >= ~8 steps (pipeline overlap + v7x megacore sharding).
    bufs = 2 * num + 2
    max_tm_budget = max(block_budget_bytes // (bufs * itemsize * tn), sub)
    target_steps = 8
    max_tm_steps = max(_cdiv(rows, target_steps), sub)
    tm = min(max_tm_budget, max_tm_steps)
    tm = max((tm // sub) * sub, sub)

    rows_padded = _cdiv(rows, tm) * tm
    return tn, tm, rows_padded


def fast_fusion(features, weights):
    """JAX wrapper: `features` is a list of identically shaped NCHW arrays."""
    num = len(features)
    feat_shape = features[0].shape
    dtype = features[0].dtype
    total = math.prod(feat_shape)
    itemsize = jnp.dtype(dtype).itemsize

    block_budget, vmem_limit = _vmem_budgets()
    tn, tm, rows_padded = _choose_tiling(total, num, dtype, block_budget)
    padded_total = rows_padded * tn
    grid = rows_padded // tm

    # Flatten; pad (zeros) only when the shape is not already tile-aligned so
    # the common case stays a metadata-only reshape.
    if padded_total == total:
        flat = [f.reshape(rows_padded, tn) for f in features]
    else:
        pad = padded_total - total
        flat = [
            jnp.pad(f.reshape(-1), (0, pad)).reshape(rows_padded, tn)
            for f in features
        ]

    # Pre-normalized fusion weights (tiny scalar work done once in the wrapper):
    #   w_i' = relu(w_i) / (sum_j relu(w_j) + eps)
    w = jnp.maximum(weights.astype(jnp.float32), 0.0)
    w_norm = w / (jnp.sum(w) + jnp.float32(EPS))

    block_spec = pl.BlockSpec((tm, tn), lambda i, w_: (i, 0))
    # TODO(synk): if an xprof trace on v5e still shows exposed DMA between grid
    # steps, raise input depth with pipeline_mode=pl.Buffered(3) (re-check the
    # (3*num + 2)-block VMEM formula against the budget).

    cost = pl.CostEstimate(
        flops=2 * num * total,
        transcendentals=0,
        bytes_accessed=(num + 1) * total * itemsize,
    )

    out = pl.pallas_call(
        _fast_fusion_kernel,
        out_shape=jax.ShapeDtypeStruct((rows_padded, tn), dtype),
        grid_spec=pltpu.PrefetchScalarGridSpec(
            num_scalar_prefetch=1,               # normalized weights -> SMEM
            grid=(grid,),
            in_specs=[block_spec] * num,         # one spec per feature (no stack)
            out_specs=pl.BlockSpec((tm, tn), lambda i, w_: (i, 0)),
        ),
        compiler_params=pltpu.CompilerParams(
            dimension_semantics=("parallel",),   # shard row axis across TCs (v7x)
            vmem_limit_bytes=vmem_limit,         # headroom over the block budget
        ),
        cost_estimate=cost,
    )(w_norm, *flat)

    if padded_total == total:
        return out.reshape(feat_shape)
    return out.reshape(-1)[:total].reshape(feat_shape)


def fast_fusion_ref(features, weights):
    """Pure-JAX reference for correctness checking."""
    w = jnp.maximum(weights.astype(jnp.float32), 0.0)
    denom = jnp.sum(w) + EPS
    acc = sum(w[i] * features[i].astype(jnp.float32) for i in range(len(features)))
    return (acc / denom).astype(features[0].dtype)


if __name__ == "__main__":
    key = jax.random.PRNGKey(0)
    num = 3                                   # number of fused feature maps
    N, C, H, W = 2, 4, 16, 16                 # NCHW, matches PyTorch conv layout

    k_feat, k_w = jax.random.split(key)
    feat_keys = jax.random.split(k_feat, num)
    features = [
        jax.random.normal(feat_keys[i], (N, C, H, W), dtype=jnp.float32)
        for i in range(num)
    ]
    # Deterministic "learnable" fusion weights (Fusion.__init__ would create
    # `num` scalar parameters); some negative to exercise the ReLU gating.
    fusion_weights = jax.random.normal(k_w, (num,), dtype=jnp.float32)

    out = fast_fusion(features, fusion_weights)
    out = jax.block_until_ready(out)

    ref = fast_fusion_ref(features, fusion_weights)
    assert out.shape == (N, C, H, W)
    assert jnp.allclose(out, ref, atol=1e-5, rtol=1e-5), "mismatch vs reference"

    # Also exercise a non-tile-aligned shape to cover the padded-tail path.
    odd_shape = (2, 3, 17, 17)
    odd_keys = jax.random.split(jax.random.PRNGKey(1), num)
    odd_feats = [
        jax.random.normal(odd_keys[i], odd_shape, dtype=jnp.float32)
        for i in range(num)
    ]
    odd_out = jax.block_until_ready(fast_fusion(odd_feats, fusion_weights))
    odd_ref = fast_fusion_ref(odd_feats, fusion_weights)
    assert odd_out.shape == odd_shape
    assert jnp.allclose(odd_out, odd_ref, atol=1e-5, rtol=1e-5), "padded-tail mismatch"

    print("KERNEL_OK")
</pallas_src>

<mosaic_0001>
module attributes {stable_mosaic.version = 11 : i64} {
  func.func @_fast_fusion_kernel(%arg0: i32, %arg1: memref<3xf32, #tpu.memory_space<smem>>, %arg2: memref<8x256xf32, #tpu.memory_space<vmem>>, %arg3: memref<8x256xf32, #tpu.memory_space<vmem>>, %arg4: memref<8x256xf32, #tpu.memory_space<vmem>>, %arg5: memref<8x256xf32, #tpu.memory_space<vmem>>) attributes {dimension_semantics = [#tpu.dimension_semantics<parallel>], iteration_bounds = array<i64: 1>, scalar_prefetch = 1 : i64, scratch_operands = 0 : i64, tpu.core_type = #tpu.core_type<tc>, window_params = [{transform_indices = @transform_0, window_bounds = array<i64: 8, 256>}, {transform_indices = @transform_1, window_bounds = array<i64: 8, 256>}, {transform_indices = @transform_2, window_bounds = array<i64: 8, 256>}, {transform_indices = @transform_3, window_bounds = array<i64: 8, 256>}]} {
    %c0 = arith.constant 0 : index
    %0 = memref.load %arg1[%c0] : memref<3xf32, #tpu.memory_space<smem>>
    %c0_0 = arith.constant 0 : index
    %c0_1 = arith.constant 0 : index
    %1 = vector.load %arg2[%c0_0, %c0_1] : memref<8x256xf32, #tpu.memory_space<vmem>>, vector<8x256xf32>
    %2 = vector.broadcast %0 : f32 to vector<8x256xf32>
    %3 = arith.mulf %2, %1 : vector<8x256xf32>
    %c1 = arith.constant 1 : index
    %4 = memref.load %arg1[%c1] : memref<3xf32, #tpu.memory_space<smem>>
    %c0_2 = arith.constant 0 : index
    %c0_3 = arith.constant 0 : index
    %5 = vector.load %arg3[%c0_2, %c0_3] : memref<8x256xf32, #tpu.memory_space<vmem>>, vector<8x256xf32>
    %6 = vector.broadcast %4 : f32 to vector<8x256xf32>
    %7 = arith.mulf %6, %5 : vector<8x256xf32>
    %8 = arith.addf %3, %7 : vector<8x256xf32>
    %c2 = arith.constant 2 : index
    %9 = memref.load %arg1[%c2] : memref<3xf32, #tpu.memory_space<smem>>
    %c0_4 = arith.constant 0 : index
    %c0_5 = arith.constant 0 : index
    %10 = vector.load %arg4[%c0_4, %c0_5] : memref<8x256xf32, #tpu.memory_space<vmem>>, vector<8x256xf32>
    %11 = vector.broadcast %9 : f32 to vector<8x256xf32>
    %12 = arith.mulf %11, %10 : vector<8x256xf32>
    %13 = arith.addf %8, %12 : vector<8x256xf32>
    %c0_6 = arith.constant 0 : index
    %c0_7 = arith.constant 0 : index
    %14 = vector.load %arg5[%c0_6, %c0_7] : memref<8x256xf32, #tpu.memory_space<vmem>>, vector<8x256xf32>
    tpu.vector_store %arg5[%c0_6, %c0_7], %13 {strides = array<i32>} : memref<8x256xf32, #tpu.memory_space<vmem>>, vector<8x256xf32>,
    return
  }
  func.func @transform_0(%arg0: i32, %arg1: memref<3xf32, #tpu.memory_space<smem>>) -> (i32, i32) {
    %c0_i32 = arith.constant 0 : i32
    %c0_i32_0 = arith.constant 0 : i32
    return %arg0, %c0_i32 : i32, i32
  }
  func.func @transform_1(%arg0: i32, %arg1: memref<3xf32, #tpu.memory_space<smem>>) -> (i32, i32) {
    %c0_i32 = arith.constant 0 : i32
    %c0_i32_0 = arith.constant 0 : i32
    return %arg0, %c0_i32 : i32, i32
  }
  func.func @transform_2(%arg0: i32, %arg1: memref<3xf32, #tpu.memory_space<smem>>) -> (i32, i32) {
    %c0_i32 = arith.constant 0 : i32
    %c0_i32_0 = arith.constant 0 : i32
    return %arg0, %c0_i32 : i32, i32
  }
  func.func @transform_3(%arg0: i32, %arg1: memref<3xf32, #tpu.memory_space<smem>>) -> (i32, i32) {
    %c0_i32 = arith.constant 0 : i32
    %c0_i32_0 = arith.constant 0 : i32
    return %arg0, %c0_i32 : i32, i32
  }
}

</mosaic_0001>

<bundles_post_ra>
// kernel: tpu_custom_call.1
= control target key start
LH: loop header
LB: loop body
LE: loop exit
PB: predicated region body
PF: predicated region fallthrough
CT: control target
= control target key end

     0   :  { %s230_s18 = smov [#allocation3]   ;;  %s275_s0 = inlined_call_operand.hbm [shape: f32[3], index: 0, kind: input, shape index: {}]   ;;  %s276_s1 = inlined_call_operand.hbm [shape: f32[8,256], index: 1, kind: input, shape index: {}]   ;;  %s277_s2 = inlined_call_operand.hbm [shape: f32[8,256], index: 2, kind: input, shape index: {}]   ;;  %s278_s3 = inlined_call_operand.hbm [shape: f32[8,256], index: 3, kind: input, shape index: {}]   ;;  %s279_s4 = inlined_call_operand.hbm [shape: f32[8,256], index: 4, kind: output, shape index: {}]  }
   0x1   :  { %s10_s17 = sshll.u32 %s275_s0, 4  ;;  %s11_s17 = int_to_ptr.hbm [resolvable:$true] %s10_s17 }
   0x2   :  { %13 = dma.hbm_to_smem %s11_s17, 16, %s230_s18, [#allocation2] }
   0x3   :  { %222 = dma.done.wait [#allocation2], 16 }
   0x4   :  { %223 = vsyncadd [#allocation2], 4294967280 }
   0x5   :  { %16 = sfence }
   0x6   :  { %17 = vsyncpa [#allocation5], 0 }
   0x7   :  { %18 = vsyncpa [#allocation8], 0  ;;  %s36_s21 = sshll.u32 %s277_s2, 4  ;;  %s37_s21 = int_to_ptr.hbm [resolvable:$true] %s36_s21 }
   0x8   :  { %19 = vsyncpa [#allocation6], 0  ;;  %s231_s22 = smov [#allocation7]   ;;  %s25_s0 = sshll.u32 %s276_s1, 4  ;;  %s26_s0 = int_to_ptr.hbm [resolvable:$true] %s25_s0 }
   0x9   :  { %s38_s23 = sshll.u32 %s231_s22, 4  ;;  %s232_s26 = smov [#allocation4]   ;;  %s39_s23 = int_to_ptr.vmem [resolvable:$true] %s38_s23 }
   0xa   :  { %41 = dma.hbm_to_vmem [thread:$0]  %s37_s21, 256, %s39_s23, [#allocation8]  }
   0xb   :  { %s27_s27 = sshll.u32 %s232_s26, 4  ;;  %s47_s30 = sshll.u32 %s278_s3, 4  ;;  %s28_s27 = int_to_ptr.vmem [resolvable:$true] %s27_s27  ;;  %s48_s30 = int_to_ptr.hbm [resolvable:$true] %s47_s30 }
   0xc   :  { %30 = dma.hbm_to_vmem [thread:$0]  %s26_s0, 256, %s28_s27, [#allocation5]  }
   0xd   :  { %s233_s2 = smov [#allocation9]  }
   0xe   :  { %s49_s5 = sshll.u32 %s233_s2, 4  ;;  %s50_s5 = int_to_ptr.vmem [resolvable:$true] %s49_s5 }
   0xf   :  { %52 = dma.hbm_to_vmem [thread:$0]  %s48_s30, 256, %s50_s5, [#allocation8]  }
  0x10   :  { %224 = dma.done.wait [#allocation5], 256  }
  0x11   :  { %225 = vsyncadd [#allocation5], 4294967040 }
  0x12   :  { %226 = dma.done.wait [#allocation8], 512  }
  0x13   :  { %227 = vsyncadd [#allocation8], 4294966784  ;;  %s65_s1 = sld [smem:[#allocation3]]  ;;  %v66_v0 = vld [vmem:[#allocation4] sm:$0xff]  ;;  %v72_v2 = vld [vmem:[#allocation7] sm:$0xff]  ;;  %s234_s3 = smov [#allocation10]  }
  0x14   :  { %s107_s6 = sld [smem:[#allocation3 + $0x1]]  ;;  %v80_v3 = vld [vmem:[#allocation9] sm:$0xff]  ;;  %v67_v6 = vld [vmem:[#allocation4 + $0x8] sm:$0xff]  ;;  %v73_v7 = vld [vmem:[#allocation7 + $0x8] sm:$0xff]  ;;  %s94_s8 = sshll.u32 %s234_s3, 4  ;;  %s95_s8 = int_to_ptr.vmem [resolvable:$true] %s94_s8 }
  0x15   :  { %s108_s7 = sld [smem:[#allocation3 + $0x2]]  ;;  %v81_v8 = vld [vmem:[#allocation9 + $0x8] sm:$0xff]  ;;  %s96_s11 = sshll.u32 %s279_s4, 4  ;;  %s97_s11 = int_to_ptr.hbm [resolvable:$true] %s96_s11 }
  0x19   :  { %v68_v1 = vstv %s65_s1 }
  0x1a   :  { %v69_v4 = vmul.f32 %v68_v1, %v66_v0  ;;  %v74_v5 = vstv %s107_s6  ;;  %v70_v11 = vmul.f32 %v68_v1, %v67_v6 }
  0x1b   :  { %v75_v9 = vmul.f32 %v74_v5, %v72_v2  ;;  %v82_v10 = vstv %s108_s7  ;;  %v76_v12 = vmul.f32 %v74_v5, %v73_v7 }
  0x1c   :  { %v83_v13 = vmul.f32 %v82_v10, %v80_v3  ;;  %v84_v14 = vmul.f32 %v82_v10, %v81_v8 }
  0x1d   :  { %v77_v15 = vadd.f32 %v75_v9, %v69_v4  ;;  %v78_v16 = vadd.f32 %v76_v12, %v70_v11 }
  0x1f   :  { %v85_v17 = vadd.f32 %v83_v13, %v77_v15  ;;  %v86_v18 = vadd.f32 %v84_v14, %v78_v16 }
  0x21   :  { %87 = vst [vmem:[#allocation10] sm:$0xff] %v85_v17 }
  0x22   :  { %88 = vst [vmem:[#allocation10 + $0x8] sm:$0xff] %v86_v18 }
  0x23   :  { %99 = dma.vmem_to_hbm [thread:$0]  %s95_s8, 256, %s97_s11, [#allocation6]  }
  0x24   :  { %228 = dma.done.wait [#allocation6], 256  }
  0x25   :  { %229 = vsyncadd [#allocation6], 4294967040 }
  0x26   :  { %104 = vsyncpa [#allocation5], 1 }
  0x27   :  { %105 = vsyncpa [#allocation8], 1 }
  0x28   :  { %106 = vsyncpa [#allocation6], 1 }

</bundles_post_ra>
